<compile_context>
chip_gen: v7x
topology: tpu7x:2x2x1
jax: 0.10.0
libtpu: 0.0.40
codegen_flags: <defaults>
</compile_context>

<pallas_src>
import jax
import jax.numpy as jnp
from jax.experimental import pallas as pl
from jax.experimental.pallas import tpu as pltpu

N_EMBD = 64
N_HEAD = 4
HEAD_SIZE = N_EMBD // N_HEAD
BLOCK_SIZE = 32          # causal-mask capacity (tril buffer size in torch code)
FF_HIDDEN = 4 * N_EMBD
LN_EPS = 1e-5

# bf16 MXU operands (f32 accumulation) on all of v5e/v6e/v7x. Set to
# jnp.float32 to recover exact f32 numerics.
MATMUL_DTYPE = jnp.bfloat16


def _layernorm(x, gamma, beta):
    mean = jnp.mean(x, axis=-1, keepdims=True)
    var = jnp.mean((x - mean) ** 2, axis=-1, keepdims=True)
    return (x - mean) * jax.lax.rsqrt(var + LN_EPS) * gamma + beta


def _mm(a, w):
    # `w` is expected to already be in MATMUL_DTYPE (cast once in the wrapper).
    return jnp.dot(a.astype(MATMUL_DTYPE), w.astype(MATMUL_DTYPE),
                   preferred_element_type=jnp.float32)


def block_kernel(x_ref,
                 wqkv_ref, wproj_ref, bproj_ref,
                 w1_ref, b1_ref, w2_ref, b2_ref,
                 g1_ref, be1_ref, g2_ref, be2_ref,
                 out_ref):
    bb, T, C = x_ref.shape            # one batch-block (bb sequences) per step
    R = bb * T

    x = x_ref[...].astype(jnp.float32).reshape(R, C)        # (R, C) row slab

    # ---------------- LN1 + multi-head causal self-attention ----------------
    h = _layernorm(x, g1_ref[0], be1_ref[0])                # (R, C), f32

    # Fused QKV: one (R, C) @ (C, 3C) GEMM. The 1/sqrt(n_embd) scale is
    # already folded into the Q columns of wqkv (wrapper).
    qkv = _mm(h, wqkv_ref[...])                             # (R, 3C), f32 acc
    q = qkv[:, 0 * C:1 * C].reshape(bb, T, C)
    k = qkv[:, 1 * C:2 * C].reshape(bb, T, C)
    v = qkv[:, 2 * C:3 * C].reshape(bb, T, C)

    # Causal mask as an additive bias, built ONCE per grid step (the head loop
    # is statically unrolled and JAX does not CSE select/broadcast).
    row = jax.lax.broadcasted_iota(jnp.int32, (T, T), 0)
    col = jax.lax.broadcasted_iota(jnp.int32, (T, T), 1)
    mask_add = jnp.where(row >= col, 0.0, -1e30).astype(jnp.float32)   # (T, T)

    head_outs = []
    for hidx in range(N_HEAD):
        s = hidx * HEAD_SIZE
        qh = q[:, :, s:s + HEAD_SIZE].astype(MATMUL_DTYPE)  # (bb, T, hs)
        kh = k[:, :, s:s + HEAD_SIZE].astype(MATMUL_DTYPE)
        vh = v[:, :, s:s + HEAD_SIZE].astype(MATMUL_DTYPE)
        wei = jnp.einsum('bqd,bkd->bqk', qh, kh,
                         preferred_element_type=jnp.float32)           # (bb,T,T)
        wei = wei + mask_add                                # hoisted causal bias
        wei = wei - jnp.max(wei, axis=-1, keepdims=True)
        p = jnp.exp(wei)
        # Exact reciprocal: avoids the approx-recip error compounding concern.
        p = p * pl.reciprocal(jnp.sum(p, axis=-1, keepdims=True), approx=False)
        oh = jnp.einsum('bqk,bkd->bqd', p.astype(MATMUL_DTYPE), vh,
                        preferred_element_type=jnp.float32)            # (bb,T,hs)
        head_outs.append(oh.reshape(R, HEAD_SIZE))

    # Contiguous 16-lane concat -> single K=64 output-projection GEMM
    # (replaces 4 near-empty K=16 MXU pushes + 3 full-width VPU adds).
    sa = jnp.concatenate(head_outs, axis=-1)                # (R, C)
    sa = _mm(sa, wproj_ref[...]) + bproj_ref[0]

    x = x + sa                                              # dropout(p=0) = id

    # ---------------- LN2 + feed-forward ----------------
    h2 = _layernorm(x, g2_ref[0], be2_ref[0])
    ff = _mm(h2, w1_ref[...]) + b1_ref[0]
    ff = jnp.maximum(ff, 0.0)                               # ReLU
    ff = _mm(ff, w2_ref[...]) + b2_ref[0]

    out_ref[...] = (x + ff).reshape(bb, T, C).astype(out_ref.dtype)


def _pick_batch_block(B, T, target_rows=2048):
    """Largest divisor bb of B with bb*T <= target_rows and grid >= 2.

    target_rows=2048 keeps f32 intermediates (~7.5 KiB/row incl. FFN hidden
    and per-head probs) + double-buffered x/out blocks well under the 48 MiB
    vmem limit set below (v7x: 64 MiB physical; v5e: limit must be raised over
    the 16 MiB scoped default, done via CompilerParams).
    bb <= B//2 keeps at least 2 grid steps so v7x's 2 TensorCores both get
    work from the ("parallel",) grid axis; the extra step is ~0.35 us on
    single-TC v5e/v6e.
    """
    bb_cap = max(1, B // 2)
    bb = 1
    for d in range(1, B + 1):
        if B % d == 0 and d <= bb_cap and d * T <= target_rows:
            bb = d
    return bb


def block_forward(x, params):
    (wqkv, wproj, bproj, w1, b1, w2, b2, g1, be1, g2, be2) = params
    B, T, C = x.shape
    assert C == N_EMBD and T <= BLOCK_SIZE

    # Fold the attention scale (n_embd**-0.5 = 0.125, an exact power of two,
    # so the fold is bit-exact) into the Q columns of the fused QKV weight.
    scale = float(N_EMBD) ** -0.5
    wqkv = wqkv.at[:, :C].multiply(scale)

    # Cast GEMM weights to the MXU operand dtype once here (loaded once, stay
    # resident across grid steps); biases and LN params remain f32.
    wqkv = wqkv.astype(MATMUL_DTYPE)
    wproj_c = wproj.astype(MATMUL_DTYPE)
    w1_c = w1.astype(MATMUL_DTYPE)
    w2_c = w2.astype(MATMUL_DTYPE)

    bb = _pick_batch_block(B, T)      # bb*T rows per step; fewer, taller steps
    grid = (B // bb,)

    def full_spec(shape):
        return pl.BlockSpec(shape, lambda b, _n=len(shape): (0,) * _n)

    in_specs = [
        pl.BlockSpec((bb, T, C), lambda b: (b, 0, 0)),         # x (batch-block)
        full_spec((C, 3 * C)),                                 # Wqkv (fused, scaled Q)
        full_spec((C, C)),                                     # Wproj
        full_spec((1, C)),                                     # bproj
        full_spec((C, FF_HIDDEN)),                             # W1
        full_spec((1, FF_HIDDEN)),                             # b1
        full_spec((FF_HIDDEN, C)),                             # W2
        full_spec((1, C)),                                     # b2
        full_spec((1, C)),                                     # ln1 gamma
        full_spec((1, C)),                                     # ln1 beta
        full_spec((1, C)),                                     # ln2 gamma
        full_spec((1, C)),                                     # ln2 beta
    ]

    return pl.pallas_call(
        block_kernel,
        out_shape=jax.ShapeDtypeStruct((B, T, C), x.dtype),
        grid_spec=pltpu.PrefetchScalarGridSpec(
            num_scalar_prefetch=0,
            grid=grid,
            in_specs=in_specs,
            out_specs=pl.BlockSpec((bb, T, C), lambda b: (b, 0, 0)),
        ),
        compiler_params=pltpu.CompilerParams(
            dimension_semantics=("parallel",),
            # Raise v5e's 16 MiB scoped default; stays <= ~48 MiB for v7x's
            # 64 MiB physical VMEM per the review's headroom guidance.
            vmem_limit_bytes=48 * 1024 * 1024,
        ),
    )(x, wqkv, wproj_c, bproj, w1_c, b1, w2_c, b2, g1, be1, g2, be2)


def init_params(key):
    ks = jax.random.split(key, 6)
    std = 0.02
    # Per-head key/query/value projections (no bias) fused as (C, 3C).
    wqkv = jax.random.normal(ks[0], (N_EMBD, 3 * N_EMBD), jnp.float32) * std
    wproj = jax.random.normal(ks[1], (N_EMBD, N_EMBD), jnp.float32) * std
    bproj = jax.random.normal(ks[2], (1, N_EMBD), jnp.float32) * std
    w1 = jax.random.normal(ks[3], (N_EMBD, FF_HIDDEN), jnp.float32) * std
    b1 = jax.random.normal(ks[4], (1, FF_HIDDEN), jnp.float32) * std
    w2 = jax.random.normal(ks[5], (FF_HIDDEN, N_EMBD), jnp.float32) * std
    b2 = jnp.zeros((1, N_EMBD), jnp.float32)
    # nn.LayerNorm default init: weight=1, bias=0
    g1 = jnp.ones((1, N_EMBD), jnp.float32)
    be1 = jnp.zeros((1, N_EMBD), jnp.float32)
    g2 = jnp.ones((1, N_EMBD), jnp.float32)
    be2 = jnp.zeros((1, N_EMBD), jnp.float32)
    return (wqkv, wproj, bproj, w1, b1, w2, b2, g1, be1, g2, be2)


def block_forward_ref(x, params):
    """Pure-JAX f32 reference mirroring the PyTorch forward exactly."""
    (wqkv, wproj, bproj, w1, b1, w2, b2, g1, be1, g2, be2) = params
    B, T, C = x.shape

    h = _layernorm(x, g1[0], be1[0])
    q = h @ wqkv[:, 0 * C:1 * C]
    k = h @ wqkv[:, 1 * C:2 * C]
    v = h @ wqkv[:, 2 * C:3 * C]
    scale = C ** (-0.5)
    mask = jnp.tril(jnp.ones((T, T), bool))
    outs = []
    for i in range(N_HEAD):
        s = i * HEAD_SIZE
        wei = (q[..., s:s + HEAD_SIZE] @
               jnp.swapaxes(k[..., s:s + HEAD_SIZE], -2, -1)) * scale
        wei = jnp.where(mask, wei, -jnp.inf)
        wei = jax.nn.softmax(wei, axis=-1)
        outs.append(wei @ v[..., s:s + HEAD_SIZE])
    sa = jnp.concatenate(outs, axis=-1) @ wproj + bproj[0]
    x = x + sa
    h2 = _layernorm(x, g2[0], be2[0])
    ff = jnp.maximum(h2 @ w1 + b1[0], 0.0) @ w2 + b2[0]
    return x + ff


if __name__ == "__main__":
    key = jax.random.PRNGKey(0)
    kx, kp = jax.random.split(key)

    B, T = 2, 8                      # small shapes; T <= block_size (32)
    x = jax.random.normal(kx, (B, T, N_EMBD), jnp.float32)
    params = init_params(kp)

    out = jax.block_until_ready(block_forward(x, params))
    ref = block_forward_ref(x, params)

    assert out.shape == (B, T, N_EMBD)
    # Tolerance 2e-2: GEMM operands are bf16 (f32 accumulation); all vector
    # math (LN, softmax, residuals) is exact f32, so the true error is a few
    # e-3 — compared against the pure-f32 reference.
    err = jnp.max(jnp.abs(out - ref))
    assert jnp.allclose(out, ref, rtol=2e-2, atol=2e-2), f"max err {err}"

    print("KERNEL_OK")
</pallas_src>

<mosaic_0001>
module attributes {stable_mosaic.version = 11 : i64} {
  func.func @block_kernel(%arg0: i32, %arg1: memref<1x8x64xf32, #tpu.memory_space<vmem>>, %arg2: memref<64x192xbf16, #tpu.memory_space<vmem>>, %arg3: memref<64x64xbf16, #tpu.memory_space<vmem>>, %arg4: memref<1x64xf32, #tpu.memory_space<vmem>>, %arg5: memref<64x256xbf16, #tpu.memory_space<vmem>>, %arg6: memref<1x256xf32, #tpu.memory_space<vmem>>, %arg7: memref<256x64xbf16, #tpu.memory_space<vmem>>, %arg8: memref<1x64xf32, #tpu.memory_space<vmem>>, %arg9: memref<1x64xf32, #tpu.memory_space<vmem>>, %arg10: memref<1x64xf32, #tpu.memory_space<vmem>>, %arg11: memref<1x64xf32, #tpu.memory_space<vmem>>, %arg12: memref<1x64xf32, #tpu.memory_space<vmem>>, %arg13: memref<1x8x64xf32, #tpu.memory_space<vmem>>) attributes {dimension_semantics = [#tpu.dimension_semantics<parallel>], iteration_bounds = array<i64: 2>, scalar_prefetch = 0 : i64, scratch_operands = 0 : i64, tpu.core_type = #tpu.core_type<tc>, window_params = [{transform_indices = @transform_0, window_bounds = array<i64: 1, 8, 64>}, {pipeline_mode = #tpu.pipeline_mode<synchronous>, transform_indices = @transform_1, window_bounds = array<i64: 64, 192>}, {pipeline_mode = #tpu.pipeline_mode<synchronous>, transform_indices = @transform_2, window_bounds = array<i64: 64, 64>}, {pipeline_mode = #tpu.pipeline_mode<synchronous>, transform_indices = @transform_3, window_bounds = array<i64: 1, 64>}, {pipeline_mode = #tpu.pipeline_mode<synchronous>, transform_indices = @transform_4, window_bounds = array<i64: 64, 256>}, {pipeline_mode = #tpu.pipeline_mode<synchronous>, transform_indices = @transform_5, window_bounds = array<i64: 1, 256>}, {pipeline_mode = #tpu.pipeline_mode<synchronous>, transform_indices = @transform_6, window_bounds = array<i64: 256, 64>}, {pipeline_mode = #tpu.pipeline_mode<synchronous>, transform_indices = @transform_7, window_bounds = array<i64: 1, 64>}, {pipeline_mode = #tpu.pipeline_mode<synchronous>, transform_indices = @transform_8, window_bounds = array<i64: 1, 64>}, {pipeline_mode = #tpu.pipeline_mode<synchronous>, transform_indices = @transform_9, window_bounds = array<i64: 1, 64>}, {pipeline_mode = #tpu.pipeline_mode<synchronous>, transform_indices = @transform_10, window_bounds = array<i64: 1, 64>}, {pipeline_mode = #tpu.pipeline_mode<synchronous>, transform_indices = @transform_11, window_bounds = array<i64: 1, 64>}, {transform_indices = @transform_12, window_bounds = array<i64: 1, 8, 64>}]} {
    %c0 = arith.constant 0 : index
    %c0_0 = arith.constant 0 : index
    %c0_1 = arith.constant 0 : index
    %0 = vector.load %arg1[%c0, %c0_0, %c0_1] : memref<1x8x64xf32, #tpu.memory_space<vmem>>, vector<1x8x64xf32>
    %1 = vector.shape_cast %0 : vector<1x8x64xf32> to vector<8x64xf32>
    %c0_2 = arith.constant 0 : index
    %c0_3 = arith.constant 0 : index
    %2 = vector.load %arg9[%c0_2, %c0_3] : memref<1x64xf32, #tpu.memory_space<vmem>>, vector<1x64xf32>
    %3 = vector.shape_cast %2 : vector<1x64xf32> to vector<64xf32>
    %c0_4 = arith.constant 0 : index
    %c0_5 = arith.constant 0 : index
    %4 = vector.load %arg10[%c0_4, %c0_5] : memref<1x64xf32, #tpu.memory_space<vmem>>, vector<1x64xf32>
    %5 = vector.shape_cast %4 : vector<1x64xf32> to vector<64xf32>
    %cst = arith.constant dense<0.000000e+00> : vector<8xf32>
    %6 = vector.multi_reduction <add>, %1, %cst [1] : vector<8x64xf32> to vector<8xf32>
    %7 = vector.shape_cast %6 : vector<8xf32> to vector<8x1xf32>
    %cst_6 = arith.constant 6.400000e+01 : f32
    %8 = vector.broadcast %cst_6 : f32 to vector<8x1xf32>
    %9 = arith.divf %7, %8 : vector<8x1xf32>
    %10 = vector.broadcast %9 : vector<8x1xf32> to vector<8x64xf32>
    %11 = arith.subf %1, %10 : vector<8x64xf32>
    %12 = arith.mulf %11, %11 : vector<8x64xf32>
    %cst_7 = arith.constant dense<0.000000e+00> : vector<8xf32>
    %13 = vector.multi_reduction <add>, %12, %cst_7 [1] : vector<8x64xf32> to vector<8xf32>
    %14 = vector.shape_cast %13 : vector<8xf32> to vector<8x1xf32>
    %cst_8 = arith.constant 6.400000e+01 : f32
    %15 = vector.broadcast %cst_8 : f32 to vector<8x1xf32>
    %16 = arith.divf %14, %15 : vector<8x1xf32>
    %17 = vector.broadcast %9 : vector<8x1xf32> to vector<8x64xf32>
    %18 = arith.subf %1, %17 : vector<8x64xf32>
    %cst_9 = arith.constant 9.99999974E-6 : f32
    %19 = vector.broadcast %cst_9 : f32 to vector<8x1xf32>
    %20 = arith.addf %16, %19 : vector<8x1xf32>
    %21 = math.rsqrt %20 : vector<8x1xf32>
    %22 = vector.broadcast %21 : vector<8x1xf32> to vector<8x64xf32>
    %23 = arith.mulf %18, %22 : vector<8x64xf32>
    %24 = vector.shape_cast %3 : vector<64xf32> to vector<1x64xf32>
    %25 = vector.broadcast %24 : vector<1x64xf32> to vector<8x64xf32>
    %26 = arith.mulf %23, %25 : vector<8x64xf32>
    %27 = vector.shape_cast %5 : vector<64xf32> to vector<1x64xf32>
    %28 = vector.broadcast %27 : vector<1x64xf32> to vector<8x64xf32>
    %29 = arith.addf %26, %28 : vector<8x64xf32>
    %c0_10 = arith.constant 0 : index
    %c0_11 = arith.constant 0 : index
    %30 = vector.load %arg2[%c0_10, %c0_11] : memref<64x192xbf16, #tpu.memory_space<vmem>>, vector<64x192xbf16>
    %31 = arith.truncf %29 : vector<8x64xf32> to vector<8x64xbf16>
    %cst_12 = arith.constant dense<0.000000e+00> : vector<8x192xf32>
    %32 = tpu.matmul %31, %30, %cst_12 {dimension_numbers = #tpu.dot_dimension_numbers<[1], [0], [0], [1], [0, 0, 1, 1], [], []>} : vector<8x64xbf16>, vector<64x192xbf16>, vector<8x192xf32> -> vector<8x192xf32>
    %33 = vector.extract_strided_slice %32 {offsets = [0, 0], sizes = [8, 64], strides = [1, 1]} : vector<8x192xf32> to vector<8x64xf32>
    %34 = vector.shape_cast %33 : vector<8x64xf32> to vector<1x8x64xf32>
    %35 = vector.extract_strided_slice %32 {offsets = [0, 64], sizes = [8, 64], strides = [1, 1]} : vector<8x192xf32> to vector<8x64xf32>
    %36 = vector.shape_cast %35 : vector<8x64xf32> to vector<1x8x64xf32>
    %37 = vector.extract_strided_slice %32 {offsets = [0, 128], sizes = [8, 64], strides = [1, 1]} : vector<8x192xf32> to vector<8x64xf32>
    %38 = vector.shape_cast %37 : vector<8x64xf32> to vector<1x8x64xf32>
    %39 = tpu.iota {dimensions = array<i32: 0>} : vector<8x8xi32>
    %40 = tpu.iota {dimensions = array<i32: 1>} : vector<8x8xi32>
    %41 = arith.cmpi sge, %39, %40 : vector<8x8xi32>
    %cst_13 = arith.constant 0.000000e+00 : f32
    %cst_14 = arith.constant -1.000000e+30 : f32
    %42 = vector.broadcast %cst_13 : f32 to vector<8x8xf32>
    %43 = vector.broadcast %cst_14 : f32 to vector<8x8xf32>
    %44 = arith.select %41, %42, %43 : vector<8x8xi1>, vector<8x8xf32>
    %45 = vector.extract_strided_slice %34 {offsets = [0, 0, 0], sizes = [1, 8, 16], strides = [1, 1, 1]} : vector<1x8x64xf32> to vector<1x8x16xf32>
    %46 = arith.truncf %45 : vector<1x8x16xf32> to vector<1x8x16xbf16>
    %47 = vector.extract_strided_slice %36 {offsets = [0, 0, 0], sizes = [1, 8, 16], strides = [1, 1, 1]} : vector<1x8x64xf32> to vector<1x8x16xf32>
    %48 = arith.truncf %47 : vector<1x8x16xf32> to vector<1x8x16xbf16>
    %49 = vector.extract_strided_slice %38 {offsets = [0, 0, 0], sizes = [1, 8, 16], strides = [1, 1, 1]} : vector<1x8x64xf32> to vector<1x8x16xf32>
    %50 = arith.truncf %49 : vector<1x8x16xf32> to vector<1x8x16xbf16>
    "tpu.trace_start"() <{level = 10 : i32, message = "bqd,bkd->bqk"}> : () -> ()
    %cst_15 = arith.constant dense<0.000000e+00> : vector<1x8x8xf32>
    %51 = tpu.matmul %46, %48, %cst_15 {dimension_numbers = #tpu.dot_dimension_numbers<[2], [2], [1], [1], [0, 0, 0, 1, 1, 1], [0], [0]>} : vector<1x8x16xbf16>, vector<1x8x16xbf16>, vector<1x8x8xf32> -> vector<1x8x8xf32>
    "tpu.trace_stop"() : () -> ()
    %52 = vector.shape_cast %44 : vector<8x8xf32> to vector<1x8x8xf32>
    %53 = arith.addf %51, %52 : vector<1x8x8xf32>
    %cst_16 = arith.constant dense<0xFF800000> : vector<1x8xf32>
    %54 = vector.multi_reduction <maximumf>, %53, %cst_16 [2] : vector<1x8x8xf32> to vector<1x8xf32>
    %55 = vector.shape_cast %54 : vector<1x8xf32> to vector<1x8x1xf32>
    %56 = vector.broadcast %55 : vector<1x8x1xf32> to vector<1x8x8xf32>
    %57 = arith.subf %53, %56 : vector<1x8x8xf32>
    %58 = math.exp %57 : vector<1x8x8xf32>
    %cst_17 = arith.constant dense<0.000000e+00> : vector<1x8xf32>
    %59 = vector.multi_reduction <add>, %58, %cst_17 [2] : vector<1x8x8xf32> to vector<1x8xf32>
    %60 = vector.shape_cast %59 : vector<1x8xf32> to vector<1x8x1xf32>
    %61 = tpu.reciprocal %60 : vector<1x8x1xf32> -> vector<1x8x1xf32>
    %62 = vector.broadcast %61 : vector<1x8x1xf32> to vector<1x8x8xf32>
    %63 = arith.mulf %58, %62 : vector<1x8x8xf32>
    %64 = arith.truncf %63 : vector<1x8x8xf32> to vector<1x8x8xbf16>
    "tpu.trace_start"() <{level = 10 : i32, message = "bqk,bkd->bqd"}> : () -> ()
    %cst_18 = arith.constant dense<0.000000e+00> : vector<1x8x16xf32>
    %65 = tpu.matmul %64, %50, %cst_18 {dimension_numbers = #tpu.dot_dimension_numbers<[2], [1], [1], [2], [0, 0, 0, 1, 1, 2], [0], [0]>} : vector<1x8x8xbf16>, vector<1x8x16xbf16>, vector<1x8x16xf32> -> vector<1x8x16xf32>
    "tpu.trace_stop"() : () -> ()
    %66 = vector.shape_cast %65 : vector<1x8x16xf32> to vector<8x16xf32>
    %67 = vector.extract_strided_slice %34 {offsets = [0, 0, 16], sizes = [1, 8, 16], strides = [1, 1, 1]} : vector<1x8x64xf32> to vector<1x8x16xf32>
    %68 = arith.truncf %67 : vector<1x8x16xf32> to vector<1x8x16xbf16>
    %69 = vector.extract_strided_slice %36 {offsets = [0, 0, 16], sizes = [1, 8, 16], strides = [1, 1, 1]} : vector<1x8x64xf32> to vector<1x8x16xf32>
    %70 = arith.truncf %69 : vector<1x8x16xf32> to vector<1x8x16xbf16>
    %71 = vector.extract_strided_slice %38 {offsets = [0, 0, 16], sizes = [1, 8, 16], strides = [1, 1, 1]} : vector<1x8x64xf32> to vector<1x8x16xf32>
    %72 = arith.truncf %71 : vector<1x8x16xf32> to vector<1x8x16xbf16>
    "tpu.trace_start"() <{level = 10 : i32, message = "bqd,bkd->bqk"}> : () -> ()
    %cst_19 = arith.constant dense<0.000000e+00> : vector<1x8x8xf32>
    %73 = tpu.matmul %68, %70, %cst_19 {dimension_numbers = #tpu.dot_dimension_numbers<[2], [2], [1], [1], [0, 0, 0, 1, 1, 1], [0], [0]>} : vector<1x8x16xbf16>, vector<1x8x16xbf16>, vector<1x8x8xf32> -> vector<1x8x8xf32>
    "tpu.trace_stop"() : () -> ()
    %74 = vector.shape_cast %44 : vector<8x8xf32> to vector<1x8x8xf32>
    %75 = arith.addf %73, %74 : vector<1x8x8xf32>
    %cst_20 = arith.constant dense<0xFF800000> : vector<1x8xf32>
    %76 = vector.multi_reduction <maximumf>, %75, %cst_20 [2] : vector<1x8x8xf32> to vector<1x8xf32>
    %77 = vector.shape_cast %76 : vector<1x8xf32> to vector<1x8x1xf32>
    %78 = vector.broadcast %77 : vector<1x8x1xf32> to vector<1x8x8xf32>
    %79 = arith.subf %75, %78 : vector<1x8x8xf32>
    %80 = math.exp %79 : vector<1x8x8xf32>
    %cst_21 = arith.constant dense<0.000000e+00> : vector<1x8xf32>
    %81 = vector.multi_reduction <add>, %80, %cst_21 [2] : vector<1x8x8xf32> to vector<1x8xf32>
    %82 = vector.shape_cast %81 : vector<1x8xf32> to vector<1x8x1xf32>
    %83 = tpu.reciprocal %82 : vector<1x8x1xf32> -> vector<1x8x1xf32>
    %84 = vector.broadcast %83 : vector<1x8x1xf32> to vector<1x8x8xf32>
    %85 = arith.mulf %80, %84 : vector<1x8x8xf32>
    %86 = arith.truncf %85 : vector<1x8x8xf32> to vector<1x8x8xbf16>
    "tpu.trace_start"() <{level = 10 : i32, message = "bqk,bkd->bqd"}> : () -> ()
    %cst_22 = arith.constant dense<0.000000e+00> : vector<1x8x16xf32>
    %87 = tpu.matmul %86, %72, %cst_22 {dimension_numbers = #tpu.dot_dimension_numbers<[2], [1], [1], [2], [0, 0, 0, 1, 1, 2], [0], [0]>} : vector<1x8x8xbf16>, vector<1x8x16xbf16>, vector<1x8x16xf32> -> vector<1x8x16xf32>
    "tpu.trace_stop"() : () -> ()
    %88 = vector.shape_cast %87 : vector<1x8x16xf32> to vector<8x16xf32>
    %89 = vector.extract_strided_slice %34 {offsets = [0, 0, 32], sizes = [1, 8, 16], strides = [1, 1, 1]} : vector<1x8x64xf32> to vector<1x8x16xf32>
    %90 = arith.truncf %89 : vector<1x8x16xf32> to vector<1x8x16xbf16>
    %91 = vector.extract_strided_slice %36 {offsets = [0, 0, 32], sizes = [1, 8, 16], strides = [1, 1, 1]} : vector<1x8x64xf32> to vector<1x8x16xf32>
    %92 = arith.truncf %91 : vector<1x8x16xf32> to vector<1x8x16xbf16>
    %93 = vector.extract_strided_slice %38 {offsets = [0, 0, 32], sizes = [1, 8, 16], strides = [1, 1, 1]} : vector<1x8x64xf32> to vector<1x8x16xf32>
    %94 = arith.truncf %93 : vector<1x8x16xf32> to vector<1x8x16xbf16>
    "tpu.trace_start"() <{level = 10 : i32, message = "bqd,bkd->bqk"}> : () -> ()
    %cst_23 = arith.constant dense<0.000000e+00> : vector<1x8x8xf32>
    %95 = tpu.matmul %90, %92, %cst_23 {dimension_numbers = #tpu.dot_dimension_numbers<[2], [2], [1], [1], [0, 0, 0, 1, 1, 1], [0], [0]>} : vector<1x8x16xbf16>, vector<1x8x16xbf16>, vector<1x8x8xf32> -> vector<1x8x8xf32>
    "tpu.trace_stop"() : () -> ()
    %96 = vector.shape_cast %44 : vector<8x8xf32> to vector<1x8x8xf32>
    %97 = arith.addf %95, %96 : vector<1x8x8xf32>
    %cst_24 = arith.constant dense<0xFF800000> : vector<1x8xf32>
    %98 = vector.multi_reduction <maximumf>, %97, %cst_24 [2] : vector<1x8x8xf32> to vector<1x8xf32>
    %99 = vector.shape_cast %98 : vector<1x8xf32> to vector<1x8x1xf32>
    %100 = vector.broadcast %99 : vector<1x8x1xf32> to vector<1x8x8xf32>
    %101 = arith.subf %97, %100 : vector<1x8x8xf32>
    %102 = math.exp %101 : vector<1x8x8xf32>
    %cst_25 = arith.constant dense<0.000000e+00> : vector<1x8xf32>
    %103 = vector.multi_reduction <add>, %102, %cst_25 [2] : vector<1x8x8xf32> to vector<1x8xf32>
    %104 = vector.shape_cast %103 : vector<1x8xf32> to vector<1x8x1xf32>
    %105 = tpu.reciprocal %104 : vector<1x8x1xf32> -> vector<1x8x1xf32>
    %106 = vector.broadcast %105 : vector<1x8x1xf32> to vector<1x8x8xf32>
    %107 = arith.mulf %102, %106 : vector<1x8x8xf32>
    %108 = arith.truncf %107 : vector<1x8x8xf32> to vector<1x8x8xbf16>
    "tpu.trace_start"() <{level = 10 : i32, message = "bqk,bkd->bqd"}> : () -> ()
    %cst_26 = arith.constant dense<0.000000e+00> : vector<1x8x16xf32>
    %109 = tpu.matmul %108, %94, %cst_26 {dimension_numbers = #tpu.dot_dimension_numbers<[2], [1], [1], [2], [0, 0, 0, 1, 1, 2], [0], [0]>} : vector<1x8x8xbf16>, vector<1x8x16xbf16>, vector<1x8x16xf32> -> vector<1x8x16xf32>
    "tpu.trace_stop"() : () -> ()
    %110 = vector.shape_cast %109 : vector<1x8x16xf32> to vector<8x16xf32>
    %111 = vector.extract_strided_slice %34 {offsets = [0, 0, 48], sizes = [1, 8, 16], strides = [1, 1, 1]} : vector<1x8x64xf32> to vector<1x8x16xf32>
    %112 = arith.truncf %111 : vector<1x8x16xf32> to vector<1x8x16xbf16>
    %113 = vector.extract_strided_slice %36 {offsets = [0, 0, 48], sizes = [1, 8, 16], strides = [1, 1, 1]} : vector<1x8x64xf32> to vector<1x8x16xf32>
    %114 = arith.truncf %113 : vector<1x8x16xf32> to vector<1x8x16xbf16>
    %115 = vector.extract_strided_slice %38 {offsets = [0, 0, 48], sizes = [1, 8, 16], strides = [1, 1, 1]} : vector<1x8x64xf32> to vector<1x8x16xf32>
    %116 = arith.truncf %115 : vector<1x8x16xf32> to vector<1x8x16xbf16>
    "tpu.trace_start"() <{level = 10 : i32, message = "bqd,bkd->bqk"}> : () -> ()
    %cst_27 = arith.constant dense<0.000000e+00> : vector<1x8x8xf32>
    %117 = tpu.matmul %112, %114, %cst_27 {dimension_numbers = #tpu.dot_dimension_numbers<[2], [2], [1], [1], [0, 0, 0, 1, 1, 1], [0], [0]>} : vector<1x8x16xbf16>, vector<1x8x16xbf16>, vector<1x8x8xf32> -> vector<1x8x8xf32>
    "tpu.trace_stop"() : () -> ()
    %118 = vector.shape_cast %44 : vector<8x8xf32> to vector<1x8x8xf32>
    %119 = arith.addf %117, %118 : vector<1x8x8xf32>
    %cst_28 = arith.constant dense<0xFF800000> : vector<1x8xf32>
    %120 = vector.multi_reduction <maximumf>, %119, %cst_28 [2] : vector<1x8x8xf32> to vector<1x8xf32>
    %121 = vector.shape_cast %120 : vector<1x8xf32> to vector<1x8x1xf32>
    %122 = vector.broadcast %121 : vector<1x8x1xf32> to vector<1x8x8xf32>
    %123 = arith.subf %119, %122 : vector<1x8x8xf32>
    %124 = math.exp %123 : vector<1x8x8xf32>
    %cst_29 = arith.constant dense<0.000000e+00> : vector<1x8xf32>
    %125 = vector.multi_reduction <add>, %124, %cst_29 [2] : vector<1x8x8xf32> to vector<1x8xf32>
    %126 = vector.shape_cast %125 : vector<1x8xf32> to vector<1x8x1xf32>
    %127 = tpu.reciprocal %126 : vector<1x8x1xf32> -> vector<1x8x1xf32>
    %128 = vector.broadcast %127 : vector<1x8x1xf32> to vector<1x8x8xf32>
    %129 = arith.mulf %124, %128 : vector<1x8x8xf32>
    %130 = arith.truncf %129 : vector<1x8x8xf32> to vector<1x8x8xbf16>
    "tpu.trace_start"() <{level = 10 : i32, message = "bqk,bkd->bqd"}> : () -> ()
    %cst_30 = arith.constant dense<0.000000e+00> : vector<1x8x16xf32>
    %131 = tpu.matmul %130, %116, %cst_30 {dimension_numbers = #tpu.dot_dimension_numbers<[2], [1], [1], [2], [0, 0, 0, 1, 1, 2], [0], [0]>} : vector<1x8x8xbf16>, vector<1x8x16xbf16>, vector<1x8x16xf32> -> vector<1x8x16xf32>
    "tpu.trace_stop"() : () -> ()
    %132 = vector.shape_cast %131 : vector<1x8x16xf32> to vector<8x16xf32>
    %133 = tpu.concatenate %66, %88, %110, %132 in 1 : vector<8x16xf32>, vector<8x16xf32>, vector<8x16xf32>, vector<8x16xf32> -> vector<8x64xf32>
    %c0_31 = arith.constant 0 : index
    %c0_32 = arith.constant 0 : index
    %134 = vector.load %arg3[%c0_31, %c0_32] : memref<64x64xbf16, #tpu.memory_space<vmem>>, vector<64x64xbf16>
    %135 = arith.truncf %133 : vector<8x64xf32> to vector<8x64xbf16>
    %cst_33 = arith.constant dense<0.000000e+00> : vector<8x64xf32>
    %136 = tpu.matmul %135, %134, %cst_33 {dimension_numbers = #tpu.dot_dimension_numbers<[1], [0], [0], [1], [0, 0, 1, 1], [], []>} : vector<8x64xbf16>, vector<64x64xbf16>, vector<8x64xf32> -> vector<8x64xf32>
    %c0_34 = arith.constant 0 : index
    %c0_35 = arith.constant 0 : index
    %137 = vector.load %arg4[%c0_34, %c0_35] : memref<1x64xf32, #tpu.memory_space<vmem>>, vector<1x64xf32>
    %138 = vector.shape_cast %137 : vector<1x64xf32> to vector<64xf32>
    %139 = vector.shape_cast %138 : vector<64xf32> to vector<1x64xf32>
    %140 = vector.broadcast %139 : vector<1x64xf32> to vector<8x64xf32>
    %141 = arith.addf %136, %140 : vector<8x64xf32>
    %142 = arith.addf %1, %141 : vector<8x64xf32>
    %c0_36 = arith.constant 0 : index
    %c0_37 = arith.constant 0 : index
    %143 = vector.load %arg11[%c0_36, %c0_37] : memref<1x64xf32, #tpu.memory_space<vmem>>, vector<1x64xf32>
    %144 = vector.shape_cast %143 : vector<1x64xf32> to vector<64xf32>
    %c0_38 = arith.constant 0 : index
    %c0_39 = arith.constant 0 : index
    %145 = vector.load %arg12[%c0_38, %c0_39] : memref<1x64xf32, #tpu.memory_space<vmem>>, vector<1x64xf32>
    %146 = vector.shape_cast %145 : vector<1x64xf32> to vector<64xf32>
    %cst_40 = arith.constant dense<0.000000e+00> : vector<8xf32>
    %147 = vector.multi_reduction <add>, %142, %cst_40 [1] : vector<8x64xf32> to vector<8xf32>
    %148 = vector.shape_cast %147 : vector<8xf32> to vector<8x1xf32>
    %cst_41 = arith.constant 6.400000e+01 : f32
    %149 = vector.broadcast %cst_41 : f32 to vector<8x1xf32>
    %150 = arith.divf %148, %149 : vector<8x1xf32>
    %151 = vector.broadcast %150 : vector<8x1xf32> to vector<8x64xf32>
    %152 = arith.subf %142, %151 : vector<8x64xf32>
    %153 = arith.mulf %152, %152 : vector<8x64xf32>
    %cst_42 = arith.constant dense<0.000000e+00> : vector<8xf32>
    %154 = vector.multi_reduction <add>, %153, %cst_42 [1] : vector<8x64xf32> to vector<8xf32>
    %155 = vector.shape_cast %154 : vector<8xf32> to vector<8x1xf32>
    %cst_43 = arith.constant 6.400000e+01 : f32
    %156 = vector.broadcast %cst_43 : f32 to vector<8x1xf32>
    %157 = arith.divf %155, %156 : vector<8x1xf32>
    %158 = vector.broadcast %150 : vector<8x1xf32> to vector<8x64xf32>
    %159 = arith.subf %142, %158 : vector<8x64xf32>
    %cst_44 = arith.constant 9.99999974E-6 : f32
    %160 = vector.broadcast %cst_44 : f32 to vector<8x1xf32>
    %161 = arith.addf %157, %160 : vector<8x1xf32>
    %162 = math.rsqrt %161 : vector<8x1xf32>
    %163 = vector.broadcast %162 : vector<8x1xf32> to vector<8x64xf32>
    %164 = arith.mulf %159, %163 : vector<8x64xf32>
    %165 = vector.shape_cast %144 : vector<64xf32> to vector<1x64xf32>
    %166 = vector.broadcast %165 : vector<1x64xf32> to vector<8x64xf32>
    %167 = arith.mulf %164, %166 : vector<8x64xf32>
    %168 = vector.shape_cast %146 : vector<64xf32> to vector<1x64xf32>
    %169 = vector.broadcast %168 : vector<1x64xf32> to vector<8x64xf32>
    %170 = arith.addf %167, %169 : vector<8x64xf32>
    %c0_45 = arith.constant 0 : index
    %c0_46 = arith.constant 0 : index
    %171 = vector.load %arg5[%c0_45, %c0_46] : memref<64x256xbf16, #tpu.memory_space<vmem>>, vector<64x256xbf16>
    %172 = arith.truncf %170 : vector<8x64xf32> to vector<8x64xbf16>
    %cst_47 = arith.constant dense<0.000000e+00> : vector<8x256xf32>
    %173 = tpu.matmul %172, %171, %cst_47 {dimension_numbers = #tpu.dot_dimension_numbers<[1], [0], [0], [1], [0, 0, 1, 1], [], []>} : vector<8x64xbf16>, vector<64x256xbf16>, vector<8x256xf32> -> vector<8x256xf32>
    %c0_48 = arith.constant 0 : index
    %c0_49 = arith.constant 0 : index
    %174 = vector.load %arg6[%c0_48, %c0_49] : memref<1x256xf32, #tpu.memory_space<vmem>>, vector<1x256xf32>
    %175 = vector.shape_cast %174 : vector<1x256xf32> to vector<256xf32>
    %176 = vector.shape_cast %175 : vector<256xf32> to vector<1x256xf32>
    %177 = vector.broadcast %176 : vector<1x256xf32> to vector<8x256xf32>
    %178 = arith.addf %173, %177 : vector<8x256xf32>
    %cst_50 = arith.constant 0.000000e+00 : f32
    %179 = vector.broadcast %cst_50 : f32 to vector<8x256xf32>
    %180 = arith.maximumf %178, %179 : vector<8x256xf32>
    %c0_51 = arith.constant 0 : index
    %c0_52 = arith.constant 0 : index
    %181 = vector.load %arg7[%c0_51, %c0_52] : memref<256x64xbf16, #tpu.memory_space<vmem>>, vector<256x64xbf16>
    %182 = arith.truncf %180 : vector<8x256xf32> to vector<8x256xbf16>
    %cst_53 = arith.constant dense<0.000000e+00> : vector<8x64xf32>
    %183 = tpu.matmul %182, %181, %cst_53 {dimension_numbers = #tpu.dot_dimension_numbers<[1], [0], [0], [1], [0, 0, 1, 1], [], []>} : vector<8x256xbf16>, vector<256x64xbf16>, vector<8x64xf32> -> vector<8x64xf32>
    %c0_54 = arith.constant 0 : index
    %c0_55 = arith.constant 0 : index
    %184 = vector.load %arg8[%c0_54, %c0_55] : memref<1x64xf32, #tpu.memory_space<vmem>>, vector<1x64xf32>
    %185 = vector.shape_cast %184 : vector<1x64xf32> to vector<64xf32>
    %186 = vector.shape_cast %185 : vector<64xf32> to vector<1x64xf32>
    %187 = vector.broadcast %186 : vector<1x64xf32> to vector<8x64xf32>
    %188 = arith.addf %183, %187 : vector<8x64xf32>
    %189 = arith.addf %142, %188 : vector<8x64xf32>
    %190 = vector.shape_cast %189 : vector<8x64xf32> to vector<1x8x64xf32>
    %c0_56 = arith.constant 0 : index
    %c0_57 = arith.constant 0 : index
    %c0_58 = arith.constant 0 : index
    %191 = vector.load %arg13[%c0_56, %c0_57, %c0_58] : memref<1x8x64xf32, #tpu.memory_space<vmem>>, vector<1x8x64xf32>
    tpu.vector_store %arg13[%c0_56, %c0_57, %c0_58], %190 {strides = array<i32>} : memref<1x8x64xf32, #tpu.memory_space<vmem>>, vector<1x8x64xf32>,
    return
  }
  func.func @transform_0(%arg0: i32) -> (i32, i32, i32) {
    %c0_i32 = arith.constant 0 : i32
    %c0_i32_0 = arith.constant 0 : i32
    %c0_i32_1 = arith.constant 0 : i32
    return %arg0, %c0_i32, %c0_i32_0 : i32, i32, i32
  }
  func.func @transform_1(%arg0: i32) -> (i32, i32) {
    %c0_i32 = arith.constant 0 : i32
    %c0_i32_0 = arith.constant 0 : i32
    %c0_i32_1 = arith.constant 0 : i32
    return %c0_i32, %c0_i32_0 : i32, i32
  }
  func.func @transform_2(%arg0: i32) -> (i32, i32) {
    %c0_i32 = arith.constant 0 : i32
    %c0_i32_0 = arith.constant 0 : i32
    %c0_i32_1 = arith.constant 0 : i32
    return %c0_i32, %c0_i32_0 : i32, i32
  }
  func.func @transform_3(%arg0: i32) -> (i32, i32) {
    %c0_i32 = arith.constant 0 : i32
    %c0_i32_0 = arith.constant 0 : i32
    %c0_i32_1 = arith.constant 0 : i32
    return %c0_i32, %c0_i32_0 : i32, i32
  }
  func.func @transform_4(%arg0: i32) -> (i32, i32) {
    %c0_i32 = arith.constant 0 : i32
    %c0_i32_0 = arith.constant 0 : i32
    %c0_i32_1 = arith.constant 0 : i32
    return %c0_i32, %c0_i32_0 : i32, i32
  }
  func.func @transform_5(%arg0: i32) -> (i32, i32) {
    %c0_i32 = arith.constant 0 : i32
    %c0_i32_0 = arith.constant 0 : i32
    %c0_i32_1 = arith.constant 0 : i32
    return %c0_i32, %c0_i32_0 : i32, i32
  }
  func.func @transform_6(%arg0: i32) -> (i32, i32) {
    %c0_i32 = arith.constant 0 : i32
    %c0_i32_0 = arith.constant 0 : i32
    %c0_i32_1 = arith.constant 0 : i32
    return %c0_i32, %c0_i32_0 : i32, i32
  }
  func.func @transform_7(%arg0: i32) -> (i32, i32) {
    %c0_i32 = arith.constant 0 : i32
    %c0_i32_0 = arith.constant 0 : i32
    %c0_i32_1 = arith.constant 0 : i32
    return %c0_i32, %c0_i32_0 : i32, i32
  }
  func.func @transform_8(%arg0: i32) -> (i32, i32) {
    %c0_i32 = arith.constant 0 : i32
    %c0_i32_0 = arith.constant 0 : i32
    %c0_i32_1 = arith.constant 0 : i32
    return %c0_i32, %c0_i32_0 : i32, i32
  }
  func.func @transform_9(%arg0: i32) -> (i32, i32) {
    %c0_i32 = arith.constant 0 : i32
    %c0_i32_0 = arith.constant 0 : i32
    %c0_i32_1 = arith.constant 0 : i32
    return %c0_i32, %c0_i32_0 : i32, i32
  }
  func.func @transform_10(%arg0: i32) -> (i32, i32) {
    %c0_i32 = arith.constant 0 : i32
    %c0_i32_0 = arith.constant 0 : i32
    %c0_i32_1 = arith.constant 0 : i32
    return %c0_i32, %c0_i32_0 : i32, i32
  }
  func.func @transform_11(%arg0: i32) -> (i32, i32) {
    %c0_i32 = arith.constant 0 : i32
    %c0_i32_0 = arith.constant 0 : i32
    %c0_i32_1 = arith.constant 0 : i32
    return %c0_i32, %c0_i32_0 : i32, i32
  }
  func.func @transform_12(%arg0: i32) -> (i32, i32, i32) {
    %c0_i32 = arith.constant 0 : i32
    %c0_i32_0 = arith.constant 0 : i32
    %c0_i32_1 = arith.constant 0 : i32
    return %arg0, %c0_i32, %c0_i32_0 : i32, i32, i32
  }
}

</mosaic_0001>

<bundles_post_ra>
// kernel: tpu_custom_call.1
= control target key start
LH: loop header
LB: loop body
LE: loop exit
PB: predicated region body
PF: predicated region fallthrough
CT: control target
= control target key end

     0   :  { %s2221_s0 = inlined_call_operand.vmem [shape: f32[2,8,64], index: 0, kind: input, shape index: {}]   ;;  %s2222_s1 = inlined_call_operand.vmem [shape: bf16[64,192], index: 1, kind: input, shape index: {}]   ;;  %s2223_s2 = inlined_call_operand.vmem [shape: bf16[64,64], index: 2, kind: input, shape index: {}]   ;;  %s2224_s3 = inlined_call_operand.vmem [shape: f32[1,64], index: 3, kind: input, shape index: {}]   ;;  %s2225_s4 = inlined_call_operand.vmem [shape: bf16[64,256], index: 4, kind: input, shape index: {}]   ;;  %s2226_s5 = inlined_call_operand.vmem [shape: f32[1,256], index: 5, kind: input, shape index: {}]   ;;  %s2227_s6 = inlined_call_operand.vmem [shape: bf16[256,64], index: 6, kind: input, shape index: {}]   ;;  %s2228_s7 = inlined_call_operand.vmem [shape: f32[1,64], index: 7, kind: input, shape index: {}]   ;;  %s2229_s8 = inlined_call_operand.vmem [shape: f32[1,64], index: 8, kind: input, shape index: {}]   ;;  %s2230_s9 = inlined_call_operand.vmem [shape: f32[1,64], index: 9, kind: input, shape index: {}]   ;;  %s2231_s10 = inlined_call_operand.vmem [shape: f32[1,64], index: 10, kind: input, shape index: {}]   ;;  %s2232_s11 = inlined_call_operand.vmem [shape: f32[1,64], index: 11, kind: input, shape index: {}]   ;;  %s2233_s12 = inlined_call_operand.hbm [shape: f32[2,8,64], index: 12, kind: output, shape index: {}]  }
   0x1   :  { %2234 = sst [smem:[#allocation5_spill]] %s2221_s0 }
   0x2   :  { %2235 = sst [smem:[#allocation6_spill]] %s2222_s1 }
   0x3   :  { %17 = vsyncpa [#allocation3], 0 }
   0x4   :  { %19 = vsyncpa [#allocation3 + $0x1], 0  ;;  %s1894_s21 = smov 0   ;;  %s1896_s22 = smov 0  }
   0x5   :  { %s1898_s23 = smov 0   ;;  %s1900_s24 = smov 0  }
   0x6 LB: > { %s1915_s25 = sadd.s32 4294967295, %s1815_s24   ;;  %s1473_s26 = sadd.s32 4294967294, %s1815_s24   ;;  %s1815_s24 = sphi %s1900_s24, %s2243_s24   ;;  %s1811_s23 = sphi %s1898_s23, %s2242_s23   ;;  %s1807_s22 = sphi %s1896_s22, %s2241_s22   ;;  %s1803_s21 = sphi %s1894_s21, %s2240_s21  }
   0x7   : > { %s1919_s27 = sadd.s32 1, %s1815_s24   ;;  %s289_s28 = sadd.s32 1, %s1811_s23 }
   0x8   : > { %s286_s29 = ssub.s32 %s1815_s24, %s1919_s27  ;;  %p299_p0 = scmp.ne.s32.totalorder %s1811_s23, %s1807_s22 }
   0x9   : > { %p287_p1 = scmp.eq.s32.totalorder %s286_s29, 0  ;;  %p300_p2 = scmp.eq.s32.totalorder %s1915_s25, 1 }
   0xa   : > { %p305_p3 = scmp.ne.s32.totalorder %s1807_s22, %s1803_s21  ;;  %p306_p4 = scmp.eq.s32.totalorder %s1473_s26, 1 }
   0xb   : > { %s1930_s30 = scalar_select %p287_p1, %s1811_s23, %s289_s28  }
   0xc   : > { %p1932_p5 = por %p300_p2, %p299_p0  ;;  %p1936_p6 = por %p306_p4, %p305_p3 }
   0xd   : > { %p1476_p7 = scmp.ge.s32.totalorder %s1815_s24, 1  ;;  %p364_p8 = scmp.lt.s32.totalorder %s1815_s24, 3 }
   0xf   : > { %p365_p9 = pnand %p1476_p7, %p364_p8 }
  0x10   : > { %p405_p10 = scmp.lt.s32.totalorder (!%p365_p9), %s1915_s25, 1  ;;  %vm413_vm0 = vcmask (!%p365_p9), 523264   ;;  %s2238_s0 = sld [smem:[#allocation5_spill]] (!%p365_p9)  ;;  %v1817_v11 = vmov (!%p365_p9), 0   ;;  %v1479_v20 = vld [vmem:[%s2229_s8] ss:$0 sm:$0xff] (!%p365_p9)  ;;  %v535_v45 = vlaneseq (!%p365_p9) }
  0x11   : > { %368 = sbr.rel (%p365_p9) target bundleno = 2586 (0xa1a), region = 68  ;;  %s2239_s1 = sld [smem:[#allocation6_spill]] (!%p365_p9)  ;;  %526 = vmatprep.mubr.bf16.mxu1 (!%p365_p9), %v1817_v11  ;;  %v1480_v22 = vld [vmem:[%s2230_s9] ss:$0 sm:$0xff] (!%p365_p9)  ;;  %v1818_v26 = vmov (!%p365_p9), 0.0   ;;  %vm1819_vm1 = vmmov (!%p365_p9), 0  }
  0x12   : > { %1591 = vmatprep.subr.bf16.mxu0 (!%p365_p9), %v1818_v26  ;;  %1593 = vmatprep.mubr.msk.bf16.mxu0 (!%p365_p9), %vm1819_vm1, %v1818_v26  ;;  %s1820_s28 = smov (!%p365_p9), 112   ;;  %s1821_s29 = smov (!%p365_p9), 64   ;;  %vm546_vm2 = vcmask (!%p365_p9), 130048   ;;  %vm609_vm3 = vcmask (!%p365_p9), 1043456   ;;  %v2022_v46 = vshrl.u32 (!%p365_p9), %v535_v45, 7  ;;  %v538_v47 = vand.u32 (!%p365_p9), 127, %v535_v45 }
  0x13   : > { %s1824_s17 = smov (!%p365_p9), 96   ;;  %s1825_s18 = smov (!%p365_p9), 16   ;;  %v1827_v48 = vmov (!%p365_p9), -1e+30   ;;  %vm593_vm5 = vcmask (!%p365_p9), 64512   ;;  %vm997_vm6 = vcmask (!%p365_p9), 261120  }
  0x14   : > { %vm539_vm4 = vcmp.ge.s32.totalorder (!%p365_p9), %v2022_v46, %v538_v47  ;;  %vm999_vm7 = vcmask (!%p365_p9), 392192  }
  0x15   : > { %v540_v49 = vsel (!%p365_p9), %vm539_vm4, 0.0, %v1827_v48 }
  0x17   : > { %v1689_v7 = vld [vmem:[%s2239_s1 + $0x4] ss:$8 sps:$4 sm:$0xff] (!%p365_p9)   ;;  %v1691_v8 = vld [vmem:[%s2239_s1] ss:$8 sps:$4 sm:$0xff] (!%p365_p9)   ;;  %v1692_v9 = vld [vmem:[%s2239_s1 + $0x14] ss:$8 sps:$4 sm:$0xff] (!%p365_p9)  }
  0x18   : > { %s406_s15 = scalar_select %p405_p10, %s1915_s25, 1  ;;  %494 = vmatprep.subr.bf16.mxu1 %v1689_v7  ;;  %v1694_v10 = vld [vmem:[%s2239_s1 + $0x10] ss:$8 sps:$4 sm:$0xff]   ;;  %v1695_v12 = vld [vmem:[%s2239_s1 + $0x24] ss:$8 sps:$4 sm:$0xff]  }
  0x19   : > { %495 = vmatpush1.bf16.msra.mxu1 %v1691_v8  ;;  %v1697_v13 = vld [vmem:[%s2239_s1 + $0x20] ss:$8 sps:$4 sm:$0xff]   ;;  %v1698_v14 = vld [vmem:[%s2239_s1 + $0x34] ss:$8 sps:$4 sm:$0xff]   ;;  %v1700_v15 = vld [vmem:[%s2239_s1 + $0x30] ss:$8 sps:$4 sm:$0xff]  }
  0x1a   : > { %s1478_s16 = sshll.u32 %s406_s15, 3  ;;  %496 = vmatprep.subr.bf16.mxu1 %v1692_v9  ;;  %s1822_s15 = smov 48  }
  0x1b   : > { %s408_s19 = scalar_lea.vmem %s2238_s0, %s1478_s16  ;;  %s1823_s16 = smov 32  }
  0x1c   : > { %v1947_v0 = vld [vmem:[%s408_s19] sm:$0xff]  ;;  %s1826_s19 = smov 80   ;;  %s1533_s0 = sshll.u32 %s1915_s25, 7 }
  0x1d   : > { %v414_v1 = vsel %vm413_vm0, %v1947_v0, 0.0  ;;  %497 = vmatpush1.bf16.msra.mxu1 %v1694_v10  ;;  %s1828_s25 = smov [#allocation2]  }
  0x1e   : > { %415 = vadd.xlane.f32.xlu0 %v414_v1  ;;  %498 = vmatprep.subr.bf16.mxu1 %v1695_v12 }
  0x21   : > { %499 = vmatpush1.bf16.msra.mxu1 %v1697_v13 }
  0x22   : > { %500 = vmatprep.subr.bf16.mxu1 %v1698_v14 }
  0x25   : > { %501 = vmatpush1.bf16.msra.mxu1 %v1700_v15 }
  0x26   : > { %1579 = vmatprep.subr.bf16.mxu1 %v1818_v26 }
  0xab   : > { %v416_v2 = vpop.xlane.xlu0 %415 }
  0xac   : > { %v418_v3 = vmul.f32 0.015625, %v416_v2 }
  0xae   : > { %v419_v4 = vsub.f32 %v1947_v0, %v418_v3 }
  0xb0   : > { %v420_v5 = vmul.f32 %v419_v4, %v419_v4 }
  0xb2   : > { %v421_v6 = vsel %vm413_vm0, %v420_v5, 0.0 }
  0xb3   : > { %422 = vadd.xlane.f32.xlu0 %v421_v6 }
 0x140   : > { %v423_v16 = vpop.xlane.xlu0 %422 }
 0x141   : > { %v424_v17 = vmul.f32 0.015625, %v423_v16 }
 0x143   : > { %v425_v18 = vadd.f32 1e-05, %v424_v17 }
 0x145   : > { %1733 = vrsqrt.f32 %v425_v18 }
 0x14f   : > { %v1734_v19 = vpop.eup %1733 }
 0x150   : > { %v427_v21 = vmul.f32 %v1734_v19, %v419_v4 }
 0x152   : > { %v434_v23 = vmul.f32 %v1479_v20, %v427_v21 }
 0x154   : > { %v441_v24 = vadd.f32 %v1480_v22, %v434_v23 }
 0x156   : > { %v450_v25 = vpack.c.bf16 %v441_v24, %v441_v24 }
 0x158   : > { %1489 = vmatmul.mubr.msk.bf16.vlgmr.msra.gmra.mrb[0].mxu1 %vm413_vm0, %v450_v25 }
 0x159   : > { %1581 = vmatprep.mubr.msk.bf16.mxu1 %vm1819_vm1, %v1818_v26 }
 0x22b   : > { %v528_v27 = vpop.f32.mrb[0].mxu1 }
 0x22c   : > { %v541_v28 = vpack.c.bf16 %v528_v27, %v528_v27  ;;  %v530_v29 = vpop.f32.mrb[1].mxu1 }
 0x22d   : > { %v532_v30 = vpop.f32.mrb[2].mxu1  ;;  %v1999_v35 = vpack.c.bf16 %v530_v29, %v530_v29 }
 0x22e   : > { %653 = vrot.lane.b32.xlu0 %v541_v28, %s1820_s28  ;;  %544 = vrot.lane.b32.xlu1 %v541_v28, %s1821_s29  ;;  %v533_v31 = vpop.f32.mrb[3].mxu1 }
 0x22f   : > { %v611_v38 = vsel %vm609_vm3, %v1999_v35, 0 }
 0x232   : > { %655 = vrot.lane.b32.xlu1 %v541_v28, %s1822_s15 }
 0x236   : > { %766 = vrot.lane.b32.xlu1 %v541_v28, %s1823_s16 }
 0x23a   : > { %764 = vrot.lane.b32.xlu1 %v541_v28, %s1824_s17 }
 0x23e   : > { %876 = vrot.lane.b32.xlu1 %v541_v28, %s1825_s18 }
 0x242   : > { %874 = vrot.lane.b32.xlu1 %v541_v28, %s1826_s19 }
 0x2a0   : > { %v545_v32 = vpop.permute.xlu1 %544  ;;  %v654_v39 = vpop.permute.xlu0 %653 }
 0x2a1   : > { %v551_v33 = vsel %vm546_vm2, %v545_v32, 0 }
 0x2a2   : > { %1580 = vmatpush3.bf16.xpose.msra.mxu1 %v551_v33 }
 0x2a3   : > { %1585 = vmatprep.subr.bf16.mxu1 %v1818_v26 }
 0x2a4   : > { %v656_v34 = vpop.permute.xlu1 %655 }
 0x2a5   : > { %v661_v36 = vsel %vm546_vm2, %v656_v34, 0 }
 0x2a6   : > { %1592 = vmatpush3.bf16.xpose.msra.mxu0 %v661_v36 }
 0x2a7   : > { %1603 = vmatprep.subr.bf16.mxu0 %v1818_v26 }
 0x2a8   : > { %v767_v37 = vpop.permute.xlu1 %766 }
 0x2a9   : > { %1582 = vmatmul.mubr.msk.bf16.vlgmr.msra.gmra.mrb[4].mxu1 %vm546_vm2, %v541_v28  ;;  %v772_v41 = vsel %vm546_vm2, %v767_v37, 0 }
 0x2aa   : > { %1586 = vmatpush3.bf16.msra.mxu1 %v611_v38  ;;  %1587 = vmatprep.mubr.msk.bf16.mxu1 %vm1819_vm1, %v1818_v26 }
 0x2ab   : > { %1597 = vmatprep.subr.bf16.mxu1 %v1818_v26 }
 0x2ac   : > { %v765_v40 = vpop.permute.xlu1 %764 }
 0x2ad   : > { %1594 = vmatmul.mubr.msk.bf16.vlgmr.msra.gmra.mrb[0].mxu0 %vm546_vm2, %v654_v39 }
 0x2ae   : > { %1604 = vmatpush3.bf16.xpose.msra.mxu0 %v772_v41  ;;  %1605 = vmatprep.mubr.msk.bf16.mxu0 %vm1819_vm1, %v1818_v26 }
 0x2af   : > { %1615 = vmatprep.subr.bf16.mxu0 %v1818_v26 }
 0x2b0   : > { %v877_v42 = vpop.permute.xlu1 %876 }
 0x2b1   : > { %v882_v43 = vsel %vm546_vm2, %v877_v42, 0 }
 0x2b4   : > { %v875_v44 = vpop.permute.xlu1 %874 }
 0x2b5   : > { %1606 = vmatmul.mubr.msk.bf16.vlgmr.msra.gmra.mrb[4].mxu0 %vm546_vm2, %v765_v40 }
 0x2b6   : > { %1616 = vmatpush3.bf16.xpose.msra.mxu0 %v882_v43  ;;  %1617 = vmatprep.mubr.msk.bf16.mxu0 %vm1819_vm1, %v1818_v26 }
 0x2b7   : > { %1627 = vmatprep.subr.bf16.mxu0 %v1818_v26 }
 0x2bd   : > { %1618 = vmatmul.mubr.msk.bf16.vlgmr.msra.gmra.mrb[8].mxu0 %vm546_vm2, %v875_v44 }
 0x2be   : > { %1635 = vmatprep.mubr.msk.bf16.mxu0 %vm1819_vm1, %v1818_v26 }
 0x37c   : > { %v587_v50 = vpop.f32.mrb[4].mxu1 }
 0x37d   : > { %v588_v51 = vadd.f32 %v587_v50, %v540_v49  ;;  %v1583_v52 = vpop.f32.mrb[5].mxu1 }
 0x37e   : > { %v590_v53 = vpop.f32.mrb[6].mxu1 }
 0x37f   : > { %v1584_v54 = vpop.f32.mrb[7].mxu1  ;;  %v594_v55 = vsel %vm593_vm5, %v588_v51, -inf }
 0x380   : > { %v697_v56 = vpop.f32.mrb[0].mxu0  ;;  %595 = vmax.xlane.f32.xlu1 %v594_v55 }
 0x381   : > { %v698_v57 = vadd.f32 %v697_v56, %v540_v49  ;;  %v1595_v58 = vpop.f32.mrb[1].mxu0  ;;  %v1701_v56 = vld [vmem:[%s2223_s2] sm:$0xff]  }
 0x382   : > { %v700_v59 = vpop.f32.mrb[2].mxu0  ;;  %1628 = vmatpush3.bf16.msra.mxu0 %v1701_v56 }
 0x383   : > { %v1596_v60 = vpop.f32.mrb[3].mxu0  ;;  %v703_v61 = vsel %vm593_vm5, %v698_v57, -inf  ;;  %1629 = vmatprep.subr.bf16.mxu0 %v1818_v26 }
 0x384   : > { %704 = vmax.xlane.f32.xlu0 %v703_v61 }
 0x388   : > { %v808_v62 = vpop.f32.mrb[4].mxu0 }
 0x389   : > { %v809_v63 = vadd.f32 %v808_v62, %v540_v49  ;;  %v1607_v1 = vpop.f32.mrb[5].mxu0 }
 0x38a   : > { %v811_v2 = vpop.f32.mrb[6].mxu0 }
 0x38b   : > { %v1608_v3 = vpop.f32.mrb[7].mxu0  ;;  %v814_v4 = vsel %vm593_vm5, %v809_v63, -inf  ;;  %v1703_v2 = vld [vmem:[%s2223_s2 + $0x10] sm:$0xff]  }
 0x38c   : > { %815 = vmax.xlane.f32.xlu1 %v814_v4  ;;  %v1704_v3 = vld [vmem:[%s2223_s2 + $0x18] sm:$0xff]  }
 0x390   : > { %v918_v5 = vpop.f32.mrb[8].mxu0 }
 0x391   : > { %v919_v6 = vadd.f32 %v918_v5, %v540_v49  ;;  %v1619_v7 = vpop.f32.mrb[9].mxu0 }
 0x392   : > { %v921_v8 = vpop.f32.mrb[10].mxu0 }
 0x393   : > { %v1620_v9 = vpop.f32.mrb[11].mxu0  ;;  %v924_v10 = vsel %vm593_vm5, %v919_v6, -inf }
 0x394   : > { %925 = vmax.xlane.f32.xlu0 %v924_v10 }
 0x40d   : > { %v596_v12 = vpop.xlane.xlu1 %595 }
 0x40e   : > { %v597_v13 = vsub.f32 %v588_v51, %v596_v12 }
 0x410   : > { %v598_v14 = vmul.f32 1.442695, %v597_v13 }
 0x411   : > { %v705_v15 = vpop.xlane.xlu0 %704 }
 0x412   : > { %1735 = vpow2.f32 %v598_v14  ;;  %v706_v16 = vsub.f32 %v698_v57, %v705_v15 }
 0x414   : > { %v707_v17 = vmul.f32 1.442695, %v706_v16 }
 0x416   : > { %1737 = vpow2.f32 %v707_v17 }
 0x419   : > { %v816_v28 = vpop.xlane.xlu1 %815 }
 0x41a   : > { %v817_v29 = vsub.f32 %v809_v63, %v816_v28 }
 0x41c   : > { %v1736_v18 = vpop.eup %1735  ;;  %v818_v30 = vmul.f32 1.442695, %v817_v29 }
 0x41d   : > { %v600_v19 = vsel %vm593_vm5, %v1736_v18, 0.0 }
 0x41e   : > { %601 = vadd.xlane.f32.xlu1 %v600_v19  ;;  %v1498_v19 = vld [vmem:[%s2224_s3] ss:$0 sm:$0xff] }
 0x420   : > { %v1738_v20 = vpop.eup %1737 }
 0x421   : > { %v926_v21 = vpop.xlane.xlu0 %925  ;;  %v709_v22 = vsel %vm593_vm5, %v1738_v20, 0.0 }
 0x422   : > { %v927_v23 = vsub.f32 %v919_v6, %v926_v21  ;;  %710 = vadd.xlane.f32.xlu0 %v709_v22 }
 0x424   : > { %v928_v24 = vmul.f32 1.442695, %v927_v23 }
 0x426   : > { %1739 = vpow2.f32 %v928_v24 }
 0x427   : > { %1741 = vpow2.f32 %v818_v30 }
 0x42f   : > { %716 = vrot.lane.b32.xlu1 %v1999_v35, %s1820_s28 }
 0x430   : > { %v1740_v25 = vpop.eup %1739 }
 0x431   : > { %v930_v27 = vsel %vm593_vm5, %v1740_v25, 0.0  ;;  %v1742_v31 = vpop.eup %1741 }
 0x432   : > { %931 = vadd.xlane.f32.xlu0 %v930_v27  ;;  %v820_v32 = vsel %vm593_vm5, %v1742_v31, 0.0 }
 0x448   : > { %826 = vrot.lane.b32.xlu0 %v1999_v35, %s1824_s17  ;;  %s2178_s17 = scalar_lea.hbm %s2233_s12, %s1533_s0 }
 0x453   : > { %821 = vadd.xlane.f32.xlu1 %v820_v32 }
 0x464   : > { %936 = vrot.lane.b32.xlu1 %v1999_v35, %s1826_s19  ;;  %s402_s19 = sand.u32 1, %s1807_s22  }
 0x465   : > { %s1477_s20 = sshll.u32 %s402_s19, 3  ;;  %s1401_s26 = scalar_lea.sflag [#allocation3], %s402_s19 }
 0x4ab   : > { %v602_v33 = vpop.xlane.xlu1 %601 }
 0x4ac   : > { %1743 = vrcp.f32 %v602_v33  ;;  %v1707_v33 = vld [vmem:[%s2225_s4 + $0x4] ss:$8 sps:$4 sm:$0xff]  }
 0x4af   : > { %v711_v34 = vpop.xlane.xlu0 %710  ;;  %v717_v38 = vpop.permute.xlu1 %716 }
 0x4b0   : > { %1745 = vrcp.f32 %v711_v34  ;;  %v722_v41 = vsel %vm609_vm3, %v717_v38, 0  ;;  %v1710_v34 = vld [vmem:[%s2225_s4 + $0x14] ss:$8 sps:$4 sm:$0xff]   ;;  %v1711_v38 = vld [vmem:[%s2225_s4 + $0x20] ss:$8 sps:$4 sm:$0xff]  }
 0x4b6   : > { %v1744_v36 = vpop.eup %1743 }
 0x4b7   : > { %v604_v37 = vmul.f32 %v1744_v36, %v1736_v18  ;;  %v1708_v36 = vld [vmem:[%s2225_s4 + $0x10] ss:$8 sps:$4 sm:$0xff]  }
 0x4b9   : > { %v605_v39 = vpack.c.bf16 %v604_v37, %v604_v37  ;;  %v1713_v37 = vld [vmem:[%s2225_s4 + $0x24] ss:$8 sps:$4 sm:$0xff]  }
 0x4ba   : > { %v1746_v40 = vpop.eup %1745 }
 0x4bb   : > { %1588 = vmatmul.mubr.msk.bf16.vlgmr.msra.gmra.mrb[8].mxu1 %vm593_vm5, %v605_v39  ;;  %v713_v42 = vmul.f32 %v1746_v40, %v1738_v20  ;;  %v1714_v39 = vld [vmem:[%s2225_s4 + $0x30] ss:$8 sps:$4 sm:$0xff]   ;;  %v1716_v40 = vld [vmem:[%s2225_s4 + $0x34] ss:$8 sps:$4 sm:$0xff]  }
 0x4bc   : > { %1598 = vmatpush3.bf16.msra.mxu1 %v722_v41  ;;  %1599 = vmatprep.mubr.msk.bf16.mxu1 %vm1819_vm1, %v1818_v26  ;;  %v1717_v41 = vld [vmem:[%s2227_s6 + $0x40] sm:$0xff]  }
 0x4bd   : > { %1609 = vmatprep.subr.bf16.mxu1 %v1818_v26  ;;  %v714_v43 = vpack.c.bf16 %v713_v42, %v713_v42  ;;  %v1718_v42 = vld [vmem:[%s2227_s6] sm:$0xff]  }
 0x4bf   : > { %v932_v35 = vpop.xlane.xlu0 %931 }
 0x4c3   : > { %v827_v44 = vpop.permute.xlu0 %826  ;;  %1600 = vmatmul.mubr.msk.bf16.vlgmr.msra.gmra.mrb[12].mxu1 %vm593_vm5, %v714_v43  ;;  %v1720_v43 = vld [vmem:[%s2227_s6 + $0x8] sm:$0xff]  }
 0x4c4   : > { %v832_v45 = vsel %vm609_vm3, %v827_v44, 0  ;;  %1611 = vmatprep.mubr.msk.bf16.mxu1 %vm1819_vm1, %v1818_v26  ;;  %v1721_v44 = vld [vmem:[%s2227_s6 + $0x50] sm:$0xff]  }
 0x4c5   : > { %1610 = vmatpush3.bf16.msra.mxu1 %v832_v45  ;;  %v1722_v45 = vld [vmem:[%s2227_s6 + $0x10] sm:$0xff]  }
 0x4c6   : > { %1621 = vmatprep.subr.bf16.mxu1 %v1818_v26 }
 0x4e0   : > { %v822_v47 = vpop.xlane.xlu1 %821 }
 0x4e1   : > { %1747 = vrcp.f32 %v822_v47  ;;  %v1723_v47 = vld [vmem:[%s2227_s6 + $0x58] sm:$0xff]  }
 0x4e2   : > { %1749 = vrcp.f32 %v932_v35  ;;  %v1719_v35 = vld [vmem:[%s2227_s6 + $0x48] sm:$0xff]  }
 0x4e4   : > { %v937_v50 = vpop.permute.xlu1 %936 }
 0x4e5   : > { %v942_v53 = vsel %vm609_vm3, %v937_v50, 0  ;;  %v1726_v50 = vld [vmem:[%s2227_s6 + $0x20] sm:$0xff]  }
 0x4eb   : > { %v1748_v48 = vpop.eup %1747 }
 0x4ec   : > { %v824_v49 = vmul.f32 %v1748_v48, %v1742_v31  ;;  %v1750_v52 = vpop.eup %1749  ;;  %v1724_v48 = vld [vmem:[%s2227_s6 + $0x18] sm:$0xff]  }
 0x4ed   : > { %v934_v54 = vmul.f32 %v1750_v52, %v1740_v25  ;;  %v1728_v52 = vld [vmem:[%s2227_s6 + $0x28] sm:$0xff]  }
 0x4ee   : > { %v825_v51 = vpack.c.bf16 %v824_v49, %v824_v49  ;;  %v1725_v49 = vld [vmem:[%s2227_s6 + $0x60] sm:$0xff]  }
 0x4ef   : > { %v935_v55 = vpack.c.bf16 %v934_v54, %v934_v54 }
 0x4f0   : > { %1612 = vmatmul.mubr.msk.bf16.vlgmr.msra.gmra.mrb[16].mxu1 %vm593_vm5, %v825_v51  ;;  %v1727_v51 = vld [vmem:[%s2227_s6 + $0x68] sm:$0xff]  }
 0x4f1   : > { %1622 = vmatpush3.bf16.msra.mxu1 %v942_v53  ;;  %1623 = vmatprep.mubr.msk.bf16.mxu1 %vm1819_vm1, %v1818_v26 }
 0x4f2   : > { %1178 = vmatprep.subr.bf16.mxu1 %v1707_v33 }
 0x4f8   : > { %1624 = vmatmul.mubr.msk.bf16.vlgmr.msra.gmra.mrb[20].mxu1 %vm593_vm5, %v935_v55 }
 0x4f9   : > { %1210 = vmatprep.mubr.bf16.mxu1 %v1817_v11  ;;  %v1702_v11 = vld [vmem:[%s2223_s2 + $0x8] sm:$0xff]  }
 0x4fa   : > { %1630 = vmatpush3.bf16.msra.mxu0 %v1702_v11  ;;  %v1731_v11 = vld [vmem:[%s2227_s6 + $0x78] sm:$0xff]  }
 0x4fb   : > { %1631 = vmatprep.subr.bf16.mxu0 %v1818_v26 }
 0x4fe   : > { %1632 = vmatpush3.bf16.msra.mxu0 %v1703_v2  ;;  %v1732_v2 = vld [vmem:[%s2227_s6 + $0x38] sm:$0xff]  }
 0x4ff   : > { %1633 = vmatprep.subr.bf16.mxu0 %v1818_v26 }
 0x502   : > { %1634 = vmatpush3.bf16.msra.mxu0 %v1704_v3  ;;  %v1127_v3 = vsub.s32 0, %v2022_v46 }
 0x503   : > { %1557 = vmatprep.subr.bf16.mxu0 %v1717_v41 }
 0x58e   : > { %v647_v57 = vpop.f32.mrb[8].mxu1 }
 0x58f   : > { %v1589_v58 = vpop.f32.mrb[9].mxu1 }
 0x590   : > { %v650_v59 = vpop.f32.mrb[10].mxu1 }
 0x591   : > { %v1590_v60 = vpop.f32.mrb[11].mxu1  ;;  %v1505_v59 = vld [vmem:[%s2232_s11] ss:$0 sm:$0xff] }
 0x596   : > { %v758_v61 = vpop.f32.mrb[12].mxu1 }
 0x597   : > { %985 = vrot.lane.b32.xlu1 %v758_v61, %s1825_s18  ;;  %v1601_v62 = vpop.f32.mrb[13].mxu1  ;;  %s404_s18 = scalar_lea.vmem [#allocation2], %s1477_s20  ;;  %s1757_s20 = sshll.u32 %s1828_s25, 4  ;;  %s1758_s20 = int_to_ptr.vmem [resolvable:$false] %s1757_s20 }
 0x598   : > { %v761_v63 = vpop.f32.mrb[14].mxu1  ;;  %s1759_s1 = scalar_lea.vmem %s1758_s20, 256 }
 0x599   : > { %v1602_v1 = vpop.f32.mrb[15].mxu1  ;;  %v1729_v63 = vld [vmem:[%s2227_s6 + $0x70] sm:$0xff]  }
 0x59a   : > { %v1730_v1 = vld [vmem:[%s2227_s6 + $0x30] sm:$0xff]  }
 0x5c3   : > { %v868_v4 = vpop.f32.mrb[16].mxu1 }
 0x5c4   : > { %989 = vrot.lane.b32.xlu0 %v868_v4, %s1823_s16  ;;  %v1613_v5 = vpop.f32.mrb[17].mxu1  ;;  %v1123_v4 = vld [vmem:[%s2226_s5] sm:$0x3] }
 0x5c5   : > { %v871_v6 = vpop.f32.mrb[18].mxu1  ;;  %v1131_v5 = vsub.s32 1, %v2022_v46  ;;  %v1515_v46 = vld [vmem:[%s2228_s7] ss:$0 sm:$0xff] }
 0x5c6   : > { %v1614_v7 = vpop.f32.mrb[19].mxu1  ;;  %v1128_v6 = vrot.slane %v1123_v4, %v1127_v3 }
 0x5c7   : > { %v1132_v7 = vrot.slane %v1123_v4, %v1131_v5 }
 0x5cb   : > { %v978_v8 = vpop.f32.mrb[20].mxu1 }
 0x5cc   : > { %993 = vrot.lane.b32.xlu1 %v978_v8, %s1822_s15  ;;  %v1625_v9 = vpop.f32.mrb[21].mxu1  ;;  %s1414_s15 = sshll.u32 %s404_s18, 4  ;;  %s2180_s15 = int_to_ptr.vmem [resolvable:$true] %s1414_s15 }
 0x5cd   : > { %v981_v10 = vpop.f32.mrb[22].mxu1  ;;  %s1753_s16 = scalar_lea.vmem %s2180_s15, 128  ;;  %p1760_p0 = scmp.lt.s32.totalorder %s2180_s15, %s1758_s20 }
 0x5ce   : > { %v1626_v12 = vpop.f32.mrb[23].mxu1  ;;  %p1754_p11 = scmp.ne.s32.totalorder %s2180_s15, %s1753_s16  ;;  %p1761_p1 = scmp.lt.s32.totalorder %s1759_s1, %s1753_s16 }
 0x5d0   : > { %p1755_p12 = pnand %p1754_p11, %p1932_p5  ;;  %p1762_p2 = por %p1761_p1, %p1760_p0 }
 0x5d2   : > { %p1756_p13 = pneg %p1755_p12 }
 0x5d4   : > { %p1763_p3 = pnand %p1762_p2, %p1756_p13 }
 0x609   : > { %v986_v13 = vpop.permute.xlu1 %985 }
 0x60a   : > { %v996_v14 = vsel %vm546_vm2, %v647_v57, %v986_v13  ;;  %v1504_v57 = vld [vmem:[%s2231_s10] ss:$0 sm:$0xff] }
 0x636   : > { %v990_v26 = vpop.permute.xlu0 %989 }
 0x637   : > { %v998_v15 = vsel %vm997_vm6, %v996_v14, %v990_v26 }
 0x63e   : > { %v994_v16 = vpop.permute.xlu1 %993 }
 0x63f   : > { %v1000_v17 = vsel %vm999_vm7, %v998_v15, %v994_v16 }
 0x640   : > { %v1009_v18 = vpack.c.bf16 %v1000_v17, %v1000_v17 }
 0x642   : > { %1636 = vmatmul.mubr.msk.bf16.vlgmr.msra.gmra.mrb[12].mxu0 %vm413_vm0, %v1009_v18 }
 0x643   : > { %1558 = vmatpush3.bf16.msra.mxu0 %v1718_v42 }
 0x644   : > { %1559 = vmatprep.subr.bf16.mxu0 %v1719_v35 }
 0x647   : > { %1560 = vmatpush3.bf16.msra.mxu0 %v1720_v43 }
 0x648   : > { %1561 = vmatprep.subr.bf16.mxu0 %v1721_v44 }
 0x64b   : > { %1562 = vmatpush3.bf16.msra.mxu0 %v1722_v45 }
 0x64c   : > { %1563 = vmatprep.subr.bf16.mxu0 %v1723_v47 }
 0x64f   : > { %1564 = vmatpush3.bf16.msra.mxu0 %v1724_v48 }
 0x650   : > { %1565 = vmatprep.subr.bf16.mxu0 %v1725_v49 }
 0x653   : > { %1566 = vmatpush3.bf16.msra.mxu0 %v1726_v50 }
 0x654   : > { %1567 = vmatprep.subr.bf16.mxu0 %v1727_v51 }
 0x657   : > { %1568 = vmatpush3.bf16.msra.mxu0 %v1728_v52 }
 0x658   : > { %1569 = vmatprep.subr.bf16.mxu0 %v1729_v63 }
 0x65b   : > { %1570 = vmatpush3.bf16.msra.mxu0 %v1730_v1 }
 0x65c   : > { %1571 = vmatprep.subr.bf16.mxu0 %v1731_v11 }
 0x65f   : > { %1572 = vmatpush3.bf16.msra.mxu0 %v1732_v2 }
 0x715   : > { %v1078_v20 = vpop.f32.mrb[12].mxu0 }
 0x716   : > { %v1079_v21 = vadd.f32 %v1498_v19, %v1078_v20  ;;  %v1637_v22 = vpop.f32.mrb[13].mxu0 }
 0x717   : > { %v1081_v23 = vpop.f32.mrb[14].mxu0 }
 0x718   : > { %v2079_v24 = vadd.f32 %v1079_v21, %v1947_v0  ;;  %v1638_v25 = vpop.f32.mrb[15].mxu0  ;;  %v1705_v0 = vld [vmem:[%s2225_s4] ss:$8 sps:$4 sm:$0xff]  }
 0x719   : > { %1179 = vmatpush1.bf16.msra.mxu1 %v1705_v0 }
 0x71a   : > { %v1087_v27 = vsel %vm413_vm0, %v2079_v24, 0.0  ;;  %1180 = vmatprep.subr.bf16.mxu1 %v1710_v34 }
 0x71b   : > { %1088 = vadd.xlane.f32.xlu0 %v1087_v27 }
 0x71d   : > { %1181 = vmatpush1.bf16.msra.mxu1 %v1708_v36 }
 0x71e   : > { %1182 = vmatprep.subr.bf16.mxu1 %v1713_v37 }
 0x721   : > { %1183 = vmatpush1.bf16.msra.mxu1 %v1711_v38 }
 0x722   : > { %1184 = vmatprep.subr.bf16.mxu1 %v1716_v40 }
 0x725   : > { %1185 = vmatpush1.bf16.msra.mxu1 %v1714_v39 }
 0x7a8   : > { %v1089_v28 = vpop.xlane.xlu0 %1088 }
 0x7a9   : > { %v1090_v29 = vmul.f32 0.015625, %v1089_v28 }
 0x7ab   : > { %v1091_v30 = vsub.f32 %v2079_v24, %v1090_v29 }
 0x7ad   : > { %v1092_v31 = vmul.f32 %v1091_v30, %v1091_v30 }
 0x7af   : > { %v1093_v32 = vsel %vm413_vm0, %v1092_v31, 0.0 }
 0x7b0   : > { %1094 = vadd.xlane.f32.xlu1 %v1093_v32 }
 0x83d   : > { %v1095_v53 = vpop.xlane.xlu1 %1094 }
 0x83e   : > { %v1096_v54 = vmul.f32 0.015625, %v1095_v53 }
 0x840   : > { %v1097_v55 = vadd.f32 1e-05, %v1096_v54 }
 0x842   : > { %1751 = vrsqrt.f32 %v1097_v55 }
 0x84c   : > { %v1752_v56 = vpop.eup %1751 }
 0x84d   : > { %v1099_v58 = vmul.f32 %v1752_v56, %v1091_v30 }
 0x84f   : > { %v1106_v60 = vmul.f32 %v1504_v57, %v1099_v58 }
 0x851   : > { %v1113_v61 = vadd.f32 %v1505_v59, %v1106_v60 }
 0x853   : > { %v1122_v62 = vpack.c.bf16 %v1113_v61, %v1113_v61 }
 0x855   : > { %1514 = vmatmul.mubr.msk.bf16.vlgmr.msra.gmra.mrb[24].mxu1 %vm413_vm0, %v1122_v62 }
 0x928   : > { %v1212_v8 = vpop.f32.mrb[24].mxu1 }
 0x929   : > { %v1213_v9 = vadd.f32 %v1212_v8, %v1128_v6  ;;  %v1214_v10 = vpop.f32.mrb[25].mxu1 }
 0x92a   : > { %v1215_v12 = vadd.f32 %v1214_v10, %v1132_v7  ;;  %v1216_v13 = vpop.f32.mrb[26].mxu1 }
 0x92b   : > { %v1219_v26 = vmax.f32 %v1213_v9, 0.0  ;;  %v1217_v14 = vpop.f32.mrb[27].mxu1 }
 0x92c   : > { %v1220_v15 = vmax.f32 %v1215_v12, 0.0 }
 0x92d   : > { %v1253_v17 = vpack.c.bf16 %v1219_v26, %v1219_v26 }
 0x92e   : > { %v1254_v16 = vpack.c.bf16 %v1220_v15, %v1220_v15 }
 0x930   : > { %1390 = vmatprep.mubr.bf16.mxu0 %v1254_v16 }
 0x931   : > { %1391 = vmatmul.mubr.bf16.vlgmr.msra.gmra.mrb[16].mxu0 %v1253_v17 }
 0xa04   : > { %v1573_v18 = vpop.f32.mrb[16].mxu0 }
 0xa05   : > { %v1574_v19 = vpop.f32.mrb[17].mxu0 }
 0xa06   : > { %v1575_v20 = vadd.f32 %v1574_v19, %v1573_v18  ;;  %v1576_v21 = vpop.f32.mrb[18].mxu0 }
 0xa07   : > { %v1577_v22 = vpop.f32.mrb[19].mxu0 }
 0xa08   : > { %v1393_v23 = vadd.f32 %v1575_v20, %v1515_v46 }
 0xa0a   : > { %v1398_v25 = vadd.f32 %v1393_v23, %v2079_v24 }
 0xa0c   : > { %1399 = vst.msk [vmem:[%s404_s18] sm:$0xff] %vm413_vm0, %v1398_v25 }
 0xa0d   : > { %1766 = shalt.err (!%p1763_p3)
}
 0xa0e   : > { %s1767_s19 = scalar_lea.hbm %s2178_s17, 128  ;;  %s1771_s28 = scalar_lea.hbm %s2233_s12, 256 }
 0xa0f   : > { %p1768_p4 = scmp.ne.s32.totalorder %s2178_s17, %s1767_s19  ;;  %p1772_p9 = scmp.lt.u32.totalorder %s2178_s17, %s2233_s12 }
 0xa10   : > { %p1773_p10 = scmp.lt.u32.totalorder %s1771_s28, %s1767_s19  ;;  %p1775_p12 = scmp.lt.u32.totalorder %s1767_s19, %s2178_s17 }
 0xa11   : > { %p1769_p7 = pnand %p1768_p4, %p1932_p5 }
 0xa12   : > { %p1774_p11 = por %p1773_p10, %p1772_p9 }
 0xa13   : > { %p1770_p8 = pneg %p1769_p7 }
 0xa14   : > { %p1776_p13 = por %p1775_p12, %p1774_p11 }
 0xa16   : > { %p1777_p0 = pnand %p1776_p13, %p1770_p8 }
 0xa18   : > { %1780 = shalt.err (!%p1777_p0)
}
 0xa19   : > { %1639 = dma.vmem_to_hbm [thread:$0]  (%p1932_p5), %s2180_s15, 128, %s2178_s17, %s1401_s26  }
 0xa1a PF: > { %p1645_p1 = scmp.ge.s32.totalorder %s1815_s24, 2  ;;  %s1426_s1 = sand.u32 1, %s1803_s21  }
 0xa1b   : > { %s1427_s16 = scalar_lea.sflag [#allocation3], %s1426_s1 }
 0xa1c   : > { %p1642_p2 = pnand %p1645_p1, %p1936_p6 }
 0xa1e   : > { %1798 = dma.done.wait (!%p1642_p2), %s1427_s16, 128  }
 0xa1f   : > { %1800 = vsyncadd (!%p1642_p2), %s1427_s16, 4294967168  ;;  %p22_p3 = scmp.ge.s32.totalorder %s1919_s27, 4   ;;  %s2240_s21 = smov %s1807_s22 }
 0xa20   : > { %s2241_s22 = smov %s1811_s23  ;;  %s2242_s23 = smov %s1930_s30 }
 0xa21   : > { %s2243_s24 = smov %s1919_s27  ;;  %24 = sbr.rel (!%p22_p3) target bundleno = 6 (0x6), region = 103 }
 0xa28   :  { %1432 = vsyncpa [#allocation3], 1 }
 0xa29   :  { %1434 = vsyncpa [#allocation3 + $0x1], 1 }

</bundles_post_ra>
